<compile_context>
chip_gen: v6e
topology: v6e:2x2x1
jax: 0.10.0
libtpu: 0.0.40
codegen_flags: <defaults>
</compile_context>

<pallas_src>
import jax
import jax.numpy as jnp
from jax.experimental import pallas as pl
from jax.experimental.pallas import tpu as pltpu

NEG_SLOPE = 1.9572
K = 4            # kernel size fixed by the module
CI = 35          # in channels fixed by the module
CO = 48          # out channels fixed by the module
CO_PAD = 128     # lane-dense (unmasked) output store


def conv_transpose2d_leaky(x_nchw, weight, bias):
    """ConvTranspose2d(35->48, k=4, s=1, p=0) + where(y>0, y, y*1.9572).

    x_nchw: (N, CI, H, W) f32; weight: (CI, CO, K, K) (PyTorch layout);
    bias: (CO,).  Returns (N, CO, OH, OW) f32 with OH=H+K-1, OW=W+K-1.
    """
    N, ci, H, W = x_nchw.shape
    ci_w, co, KH, KW = weight.shape
    assert ci == CI and ci_w == CI and co == CO and KH == K and KW == K
    OH, OW = H + K - 1, W + K - 1
    HP = OH + K - 1               # H padded by (K-1) on both sides
    KCI = K * CI                  # 140: kx folded with ci on the lane axis
    HPOW = HP * OW                # input rows per image (flattened (hp, ox))
    OHOW = OH * OW                # output rows per image

    # Images per grid step: large enough tile to amortize per-step overhead,
    # but always >= 2 grid steps so both v7x TensorCores get work.
    G = 1
    for cand in range(min(N // 2, 8), 1, -1):
        if N % cand == 0 and cand * OHOW <= 4096:
            G = cand
            break

    # ---- layout glue (pure XLA, fused under jit) ------------------------------
    # Fold the kx window into the lane axis once: xk[n,h,j,kx*CI+ci] =
    # xpadW[n,h,j+kx,ci]; then pad H so the in-kernel ky gather is a plain
    # contiguous row-slice of the flattened (hp, j) axis.
    xb = jnp.transpose(x_nchw, (0, 2, 3, 1)).astype(jnp.bfloat16)          # (N,H,W,CI)
    xb = jnp.pad(xb, ((0, 0), (0, 0), (K - 1, K - 1), (0, 0)))             # pad W
    xb = jnp.stack([xb[:, :, kx:kx + OW, :] for kx in range(K)], axis=3)   # (N,H,OW,K,CI)
    xb = xb.reshape(N, H, OW, KCI)
    xb = jnp.pad(xb, ((0, 0), (K - 1, K - 1), (0, 0), (0, 0)))             # pad H
    x2 = xb.reshape(N, HPOW, KCI)                                          # (N,HPOW,140)

    # wk[ky, kx*CI+ci, co] = weight[ci, co, K-1-ky, K-1-kx]  (transposed conv ==
    # full correlation with the flipped kernel).  KCI=140 left unpadded.
    wk = jnp.transpose(jnp.flip(weight, axis=(2, 3)), (2, 3, 0, 1)).reshape(K, KCI, CO)
    wk = jnp.pad(wk, ((0, 0), (0, 0), (0, CO_PAD - CO))).astype(jnp.bfloat16)
    b2 = jnp.pad(bias, (0, CO_PAD - CO)).reshape(1, CO_PAD).astype(jnp.float32)

    # ---- hot path: per-step, 4 MXU dots (one per ky) + bias + where ----------
    def kernel(x_ref, w_ref, b_ref, o_ref):
        # x_ref: (G, HPOW, KCI) bf16   w_ref: (K, KCI, CO_PAD) bf16
        # b_ref: (1, CO_PAD) f32       o_ref: (G, OHOW, CO_PAD) bf16
        for g in range(G):                                  # static unroll
            acc = jnp.zeros((OHOW, CO_PAD), jnp.float32)
            for ky in range(K):                             # static unroll
                xs = x_ref[g, ky * OW:ky * OW + OHOW, :]    # in-VMEM ky gather
                acc = acc + jnp.dot(xs, w_ref[ky],
                                    preferred_element_type=jnp.float32)
            y = acc + b_ref[...]
            o_ref[g] = jnp.where(y > 0.0, y, y * NEG_SLOPE).astype(o_ref.dtype)

    out2 = pl.pallas_call(
        kernel,
        out_shape=jax.ShapeDtypeStruct((N, OHOW, CO_PAD), jnp.bfloat16),
        grid_spec=pltpu.PrefetchScalarGridSpec(
            num_scalar_prefetch=0,
            grid=(N // G,),
            in_specs=[
                pl.BlockSpec((G, HPOW, KCI), lambda i: (i, 0, 0)),
                pl.BlockSpec((K, KCI, CO_PAD), lambda i: (0, 0, 0)),
                pl.BlockSpec((1, CO_PAD), lambda i: (0, 0)),
            ],
            out_specs=pl.BlockSpec((G, OHOW, CO_PAD), lambda i: (i, 0, 0)),
        ),
        compiler_params=pltpu.CompilerParams(
            dimension_semantics=("parallel",)),
    )(x2, wk, b2)

    out = out2[:, :, :CO].reshape(N, OH, OW, CO)
    # TODO(synk): NHWC consumers can take `out` directly and skip this pass.
    return jnp.transpose(out, (0, 3, 1, 2)).astype(jnp.float32)


if __name__ == "__main__":
    key = jax.random.PRNGKey(0)
    k1, k2, k3 = jax.random.split(key, 3)

    # module fixes CI=35, CO=48, K=4; small, non-square batch/spatial for test
    N, H, W = 2, 9, 7
    x = jax.random.normal(k1, (N, CI, H, W), jnp.float32)
    weight = jax.random.normal(k2, (CI, CO, K, K), jnp.float32) * 0.05
    bias = jax.random.normal(k3, (CO,), jnp.float32) * 0.1

    fwd = jax.jit(conv_transpose2d_leaky)
    out = jax.block_until_ready(fwd(x, weight, bias))

    # independent reference: scatter-form transposed conv + bias + where (f32)
    OH, OW = H + K - 1, W + K - 1
    ref = jnp.zeros((N, CO, OH, OW), jnp.float32)
    for ky in range(K):
        for kx in range(K):
            ref = ref.at[:, :, ky:ky + H, kx:kx + W].add(
                jnp.einsum('nchw,cd->ndhw', x, weight[:, :, ky, kx]))
    ref = ref + bias[None, :, None, None]
    ref = jnp.where(ref > 0, ref, ref * NEG_SLOPE)

    assert out.shape == (N, CO, OH, OW)
    # bf16 operands (f32 accumulation) + bf16 output store vs f32 reference:
    # atol covers the 560-term contraction rounding, rtol the output cast.
    # Real bugs (wrong shift / flip / bias order) would be O(1) off.
    assert bool(jnp.all(jnp.abs(out - ref) <= 6e-2 + 2e-2 * jnp.abs(ref)))
    print("KERNEL_OK")
</pallas_src>

<mosaic_0001>
module attributes {stable_mosaic.version = 11 : i64} {
  func.func @kernel(%arg0: i32, %arg1: memref<1x150x140xbf16, #tpu.memory_space<vmem>>, %arg2: memref<4x140x128xbf16, #tpu.memory_space<vmem>>, %arg3: memref<1x128xf32, #tpu.memory_space<vmem>>, %arg4: memref<1x120x128xbf16, #tpu.memory_space<vmem>>) attributes {dimension_semantics = [#tpu.dimension_semantics<parallel>], iteration_bounds = array<i64: 2>, scalar_prefetch = 0 : i64, scratch_operands = 0 : i64, tpu.core_type = #tpu.core_type<tc>, window_params = [{transform_indices = @transform_0, window_bounds = array<i64: 1, 150, 140>}, {pipeline_mode = #tpu.pipeline_mode<synchronous>, transform_indices = @transform_1, window_bounds = array<i64: 4, 140, 128>}, {pipeline_mode = #tpu.pipeline_mode<synchronous>, transform_indices = @transform_2, window_bounds = array<i64: 1, 128>}, {transform_indices = @transform_3, window_bounds = array<i64: 1, 120, 128>}]} {
    %cst = arith.constant 0.000000e+00 : f32
    %0 = vector.broadcast %cst : f32 to vector<120x128xf32>
    %c0 = arith.constant 0 : index
    %c0_0 = arith.constant 0 : index
    %c0_1 = arith.constant 0 : index
    %1 = vector.load %arg1[%c0, %c0_0, %c0_1] : memref<1x150x140xbf16, #tpu.memory_space<vmem>>, vector<1x120x140xbf16>
    %2 = vector.shape_cast %1 : vector<1x120x140xbf16> to vector<120x140xbf16>
    %c0_2 = arith.constant 0 : index
    %c0_3 = arith.constant 0 : index
    %c0_4 = arith.constant 0 : index
    %3 = vector.load %arg2[%c0_2, %c0_3, %c0_4] : memref<4x140x128xbf16, #tpu.memory_space<vmem>>, vector<1x140x128xbf16>
    %4 = vector.shape_cast %3 : vector<1x140x128xbf16> to vector<140x128xbf16>
    %cst_5 = arith.constant dense<0.000000e+00> : vector<120x128xf32>
    %5 = tpu.matmul %2, %4, %cst_5 {dimension_numbers = #tpu.dot_dimension_numbers<[1], [0], [0], [1], [0, 0, 1, 1], [], []>} : vector<120x140xbf16>, vector<140x128xbf16>, vector<120x128xf32> -> vector<120x128xf32>
    %6 = arith.addf %0, %5 : vector<120x128xf32>
    %c0_6 = arith.constant 0 : index
    %c10 = arith.constant 10 : index
    %c0_7 = arith.constant 0 : index
    %7 = vector.load %arg1[%c0_6, %c10, %c0_7] : memref<1x150x140xbf16, #tpu.memory_space<vmem>>, vector<1x120x140xbf16>
    %8 = vector.shape_cast %7 : vector<1x120x140xbf16> to vector<120x140xbf16>
    %c1 = arith.constant 1 : index
    %c0_8 = arith.constant 0 : index
    %c0_9 = arith.constant 0 : index
    %9 = vector.load %arg2[%c1, %c0_8, %c0_9] : memref<4x140x128xbf16, #tpu.memory_space<vmem>>, vector<1x140x128xbf16>
    %10 = vector.shape_cast %9 : vector<1x140x128xbf16> to vector<140x128xbf16>
    %cst_10 = arith.constant dense<0.000000e+00> : vector<120x128xf32>
    %11 = tpu.matmul %8, %10, %cst_10 {dimension_numbers = #tpu.dot_dimension_numbers<[1], [0], [0], [1], [0, 0, 1, 1], [], []>} : vector<120x140xbf16>, vector<140x128xbf16>, vector<120x128xf32> -> vector<120x128xf32>
    %12 = arith.addf %6, %11 : vector<120x128xf32>
    %c0_11 = arith.constant 0 : index
    %c20 = arith.constant 20 : index
    %c0_12 = arith.constant 0 : index
    %13 = vector.load %arg1[%c0_11, %c20, %c0_12] : memref<1x150x140xbf16, #tpu.memory_space<vmem>>, vector<1x120x140xbf16>
    %14 = vector.shape_cast %13 : vector<1x120x140xbf16> to vector<120x140xbf16>
    %c2 = arith.constant 2 : index
    %c0_13 = arith.constant 0 : index
    %c0_14 = arith.constant 0 : index
    %15 = vector.load %arg2[%c2, %c0_13, %c0_14] : memref<4x140x128xbf16, #tpu.memory_space<vmem>>, vector<1x140x128xbf16>
    %16 = vector.shape_cast %15 : vector<1x140x128xbf16> to vector<140x128xbf16>
    %cst_15 = arith.constant dense<0.000000e+00> : vector<120x128xf32>
    %17 = tpu.matmul %14, %16, %cst_15 {dimension_numbers = #tpu.dot_dimension_numbers<[1], [0], [0], [1], [0, 0, 1, 1], [], []>} : vector<120x140xbf16>, vector<140x128xbf16>, vector<120x128xf32> -> vector<120x128xf32>
    %18 = arith.addf %12, %17 : vector<120x128xf32>
    %c0_16 = arith.constant 0 : index
    %c30 = arith.constant 30 : index
    %c0_17 = arith.constant 0 : index
    %19 = vector.load %arg1[%c0_16, %c30, %c0_17] : memref<1x150x140xbf16, #tpu.memory_space<vmem>>, vector<1x120x140xbf16>
    %20 = vector.shape_cast %19 : vector<1x120x140xbf16> to vector<120x140xbf16>
    %c3 = arith.constant 3 : index
    %c0_18 = arith.constant 0 : index
    %c0_19 = arith.constant 0 : index
    %21 = vector.load %arg2[%c3, %c0_18, %c0_19] : memref<4x140x128xbf16, #tpu.memory_space<vmem>>, vector<1x140x128xbf16>
    %22 = vector.shape_cast %21 : vector<1x140x128xbf16> to vector<140x128xbf16>
    %cst_20 = arith.constant dense<0.000000e+00> : vector<120x128xf32>
    %23 = tpu.matmul %20, %22, %cst_20 {dimension_numbers = #tpu.dot_dimension_numbers<[1], [0], [0], [1], [0, 0, 1, 1], [], []>} : vector<120x140xbf16>, vector<140x128xbf16>, vector<120x128xf32> -> vector<120x128xf32>
    %24 = arith.addf %18, %23 : vector<120x128xf32>
    %c0_21 = arith.constant 0 : index
    %c0_22 = arith.constant 0 : index
    %25 = vector.load %arg3[%c0_21, %c0_22] : memref<1x128xf32, #tpu.memory_space<vmem>>, vector<1x128xf32>
    %26 = vector.broadcast %25 : vector<1x128xf32> to vector<120x128xf32>
    %27 = arith.addf %24, %26 : vector<120x128xf32>
    %cst_23 = arith.constant 0.000000e+00 : f32
    %28 = vector.broadcast %cst_23 : f32 to vector<120x128xf32>
    %29 = arith.cmpf ogt, %27, %28 : vector<120x128xf32>
    %cst_24 = arith.constant 1.957200e+00 : f32
    %30 = vector.broadcast %cst_24 : f32 to vector<120x128xf32>
    %31 = arith.mulf %27, %30 : vector<120x128xf32>
    %32 = arith.select %29, %27, %31 : vector<120x128xi1>, vector<120x128xf32>
    %33 = arith.truncf %32 : vector<120x128xf32> to vector<120x128xbf16>
    %c0_25 = arith.constant 0 : index
    %c0_26 = arith.constant 0 : index
    %c0_27 = arith.constant 0 : index
    %34 = vector.load %arg4[%c0_25, %c0_26, %c0_27] : memref<1x120x128xbf16, #tpu.memory_space<vmem>>, vector<1x120x128xbf16>
    %35 = vector.shape_cast %34 : vector<1x120x128xbf16> to vector<120x128xbf16>
    %36 = vector.shape_cast %33 : vector<120x128xbf16> to vector<1x120x128xbf16>
    tpu.vector_store %arg4[%c0_25, %c0_26, %c0_27], %36 {strides = array<i32>} : memref<1x120x128xbf16, #tpu.memory_space<vmem>>, vector<1x120x128xbf16>,
    return
  }
  func.func @transform_0(%arg0: i32) -> (i32, i32, i32) {
    %c0_i32 = arith.constant 0 : i32
    %c0_i32_0 = arith.constant 0 : i32
    %c0_i32_1 = arith.constant 0 : i32
    return %arg0, %c0_i32, %c0_i32_0 : i32, i32, i32
  }
  func.func @transform_1(%arg0: i32) -> (i32, i32, i32) {
    %c0_i32 = arith.constant 0 : i32
    %c0_i32_0 = arith.constant 0 : i32
    %c0_i32_1 = arith.constant 0 : i32
    %c0_i32_2 = arith.constant 0 : i32
    return %c0_i32, %c0_i32_0, %c0_i32_1 : i32, i32, i32
  }
  func.func @transform_2(%arg0: i32) -> (i32, i32) {
    %c0_i32 = arith.constant 0 : i32
    %c0_i32_0 = arith.constant 0 : i32
    %c0_i32_1 = arith.constant 0 : i32
    return %c0_i32, %c0_i32_0 : i32, i32
  }
  func.func @transform_3(%arg0: i32) -> (i32, i32, i32) {
    %c0_i32 = arith.constant 0 : i32
    %c0_i32_0 = arith.constant 0 : i32
    %c0_i32_1 = arith.constant 0 : i32
    return %arg0, %c0_i32, %c0_i32_0 : i32, i32, i32
  }
}

</mosaic_0001>

<bundles_post_ra>
// kernel: conv_transpose2d_leaky.1
= control target key start
LH: loop header
LB: loop body
LE: loop exit
PB: predicated region body
PF: predicated region fallthrough
CT: control target
= control target key end

     0   :  { %s1959_s12 = smov 0   ;;  %s2569_s0 = inlined_call_operand.vmem [shape: bf16[2,150,140], index: 0, kind: input, shape index: {}]   ;;  %s2570_s1 = inlined_call_operand.vmem [shape: bf16[4,140,128], index: 1, kind: input, shape index: {}]   ;;  %s2571_s2 = inlined_call_operand.vmem [shape: f32[1,128], index: 2, kind: input, shape index: {}]   ;;  %s2572_s3 = inlined_call_operand.vmem [shape: bf16[2,120,128], index: 3, kind: output, shape index: {}]  }
   0x1 LB: > { %s1570_s13 = sadd.s32 4294967295, %s1936_s12   ;;  %p1574_p0 = scmp.ge.s32.totalorder %s1936_s12, 1  ;;  %s1936_s12 = sphi %s1959_s12, %s13_s12  }
   0x2   : > { %p137_p1 = scmp.lt.s32.totalorder %s1936_s12, 3 }
   0x4   : > { %p138_p2 = pnand %p1574_p0, %p137_p1 }
   0x5   : > { %p161_p3 = scmp.lt.s32.totalorder (!%p138_p2), %s1570_s13, 1 }
   0x6   : > { %141 = sbr.rel (%p138_p2) target bundleno = 373 (0x175), region = 32 }
   0xb   : > { %v1848_v0 = vld [vmem:[%s2570_s1 + $0x80] sm:$0xff]   ;;  %v1938_v1 = vmov 0   ;;  %v1849_v2 = vld [vmem:[%s2570_s1 + $0x38] sm:$0xff]   ;;  %v1851_v4 = vld [vmem:[%s2570_s1 + $0x30] sm:$0xff]   ;;  %s2574_s13 = smov (!%p161_p3, %s1570_s13), 1  ;;  %vm383_vm0 = vcmask 97280  }
   0xc   : > { %412 = vmatprep.subr.bf16.mxu0 %v1938_v1  ;;  %618 = vmatprep.subr.bf16.mxu1 %v1938_v1  ;;  %v1850_v3 = vld [vmem:[%s2570_s1 + $0x78] sm:$0xff]   ;;  %v1852_v5 = vld [vmem:[%s2570_s1 + $0x70] sm:$0xff]   ;;  %v1853_v6 = vld [vmem:[%s2570_s1 + $0x28] sm:$0xff]   ;;  %s1837_s30 = smul.u32 152, %s2574_s13  ;;  %vm291_vm1 = vcmask 1046528   ;;  %vm408_vm2 = vcmask 1045504  }
   0xd   : > { %413 = vmatpush1.bf16.msra.mxu0 %v1848_v0  ;;  %619 = vmatpush1.bf16.msra.mxu1 %v1849_v2  ;;  %v1854_v7 = vld [vmem:[%s2570_s1 + $0x68] sm:$0xff]   ;;  %v1855_v8 = vld [vmem:[%s2570_s1 + $0x20] sm:$0xff]   ;;  %v1857_v10 = vld [vmem:[%s2570_s1 + $0x18] sm:$0xff]   ;;  %vm1142_vm3 = vcmask 1044480   ;;  %s1838_s18 = smul.u32 60, %s2574_s13 }
   0xe   : > { %414 = vmatprep.subr.bf16.mxu0 %v1938_v1  ;;  %620 = vmatprep.subr.bf16.mxu1 %v1938_v1  ;;  %v1856_v9 = vld [vmem:[%s2570_s1 + $0x60] sm:$0xff]   ;;  %s2012_s10 = scalar_lea.vmem %s2569_s0, %s1837_s30  ;;  %v1858_v11 = vld [vmem:[%s2570_s1 + $0x58] sm:$0xff]   ;;  %v1859_v12 = vld [vmem:[%s2570_s1 + $0x10] sm:$0xff]  }
   0xf   : > { %v2022_v13 = vld [vmem:[%s2012_s10 + $0x10] sm:$0xff]  ;;  %v2025_v14 = vld [vmem:[%s2012_s10 + $0x18] sm:$0xff]  ;;  %v2028_v15 = vld [vmem:[%s2012_s10 + $0x20] sm:$0xff]  ;;  %s2526_s13 = scalar_lea.vmem %s2572_s3, %s1838_s18 }
  0x10   : > { %v205_v16 = vld [vmem:[%s2012_s10 + $0x8] sm:$0xee]  ;;  %v1598_v17 = vcombine.high %v2025_v14, %v2028_v15  ;;  %v1860_v21 = vld [vmem:[%s2570_s1 + $0x50] sm:$0xff]   ;;  %v1863_v28 = vld [vmem:[%s2570_s1] sm:$0xff]   ;;  %v1597_v31 = vcombine.low %v2025_v14, %v2028_v15  ;;  %v1631_v48 = vcombine.high %v2022_v13, %v2025_v14  ;;  %v1630_v56 = vcombine.low %v2022_v13, %v2025_v14 }
  0x11   : > { %415 = vmatpush1.bf16.msra.mxu0 %v1850_v3  ;;  %621 = vmatpush1.bf16.msra.mxu1 %v1851_v4  ;;  %v1596_v18 = vcombine.high %v205_v16, %v2022_v13  ;;  %v1870_v19 = vld [vmem:[%s2012_s10 + $0x4] ss:$8 sps:$4 sm:$0xff]   ;;  %v2053_v27 = vld [vmem:[%s2012_s10 + $0x30] sm:$0xff]  ;;  %v1595_v30 = vcombine.low %v205_v16, %v2022_v13  ;;  %v2078_v39 = vld [vmem:[%s2012_s10 + $0x38] sm:$0xff] }
  0x12   : > { %416 = vmatprep.subr.bf16.mxu0 %v1938_v1  ;;  %622 = vmatprep.subr.bf16.mxu1 %v1938_v1  ;;  %v296_v20 = vrot.slane %v1598_v17, 1  ;;  %v1861_v23 = vld [vmem:[%s2570_s1 + $0x8] sm:$0xff]   ;;  %v1865_v32 = vld [vmem:[%s2570_s1 + $0x40] sm:$0x3f]   ;;  %v293_v35 = vrot.slane %v1597_v31, 1  ;;  %v1874_v45 = vld [vmem:[%s2570_s1 + $0x110] sm:$0xff]  }
  0x13   : > { %v295_v22 = vrot.slane %v1596_v18, 1  ;;  %1653 = vmatprep.mubr.msk.bf16.mxu1 %vm383_vm0, %v1870_v19  ;;  %v1862_v24 = vld [vmem:[%s2570_s1 + $0x48] sm:$0xff]   ;;  %v292_v34 = vrot.slane %v1595_v30, 1  ;;  %v616_v37 = vsel %vm408_vm2, %v1865_v32, 0  ;;  %v2081_v40 = vld [vmem:[%s2012_s10 + $0x40] sm:$0xff]  ;;  %v2118_v54 = vld [vmem:[%s2012_s10 + $0x50] sm:$0xff] }
  0x14   : > { %v177_v26 = vld [vmem:[%s2012_s10 + $0x28] sm:$0xff]  ;;  %v2097_v46 = vcombine.high %v2078_v39, %v2081_v40  ;;  %v1879_v50 = vld [vmem:[%s2570_s1 + $0xc0] sm:$0xff]   ;;  %v2129_v58 = vcombine.low %v2078_v39, %v2081_v40  ;;  %v1885_v61 = vld [vmem:[%s2570_s1 + $0xb8] sm:$0xff]  }
  0x15   : > { %417 = vmatpush1.bf16.msra.mxu0 %v1852_v5  ;;  %623 = vmatpush1.bf16.msra.mxu1 %v1853_v6  ;;  %v297_v25 = vsel %vm291_vm1, %v295_v22, %v296_v20  ;;  %v1864_v29 = vld [vmem:[%s2570_s1 + $0x88] sm:$0x3f]   ;;  %v2070_v33 = vcombine.high %v177_v26, %v2053_v27  ;;  %v294_v42 = vsel %vm291_vm1, %v292_v34, %v293_v35  ;;  %v1886_v63 = vld [vmem:[%s2570_s1 + $0x100] sm:$0xff]   ;;  %v2148_v0 = vld [vmem:[%s2012_s10 + $0x10] sm:$0xcc] }
  0x16   : > { %418 = vmatprep.subr.bf16.mxu0 %v1938_v1  ;;  %624 = vmatprep.subr.bf16.mxu1 %v1938_v1  ;;  %v410_v36 = vsel %vm408_vm2, %v1864_v29, 0  ;;  %v1868_v41 = vld [vmem:[%s2012_s10] ss:$8 sps:$4 sm:$0xff]   ;;  %v2089_v44 = vcombine.low %v177_v26, %v2053_v27  ;;  %v304_v52 = vrot.slane %v2097_v46, 1  ;;  %v2125_v57 = vcombine.high %v2028_v15, %v177_v26  ;;  %v2151_v2 = vld [vmem:[%s2012_s10 + $0x18] sm:$0x88] }
  0x17   : > { %1620 = vmatprep.mubr.msk.bf16.mxu0 %vm383_vm0, %v297_v25  ;;  %v300_v38 = vrot.slane %v2070_v33, 1  ;;  %v1873_v43 = vld [vmem:[%s2570_s1 + $0xc8] sm:$0xff]   ;;  %v2134_v60 = vcombine.low %v2028_v15, %v177_v26  ;;  %v1679_v3 = vcombine.low %v2148_v0, %v2025_v14  ;;  %v1680_v4 = vcombine.high %v2148_v0, %v2025_v14  ;;  %v1892_v16 = vld [vmem:[%s2570_s1 + $0xf8] sm:$0xff]   ;;  %v184_v18 = vld [vmem:[%s2012_s10 + $0x60] sm:$0xff] }
  0x18   : > { %v298_v49 = vrot.slane %v2089_v44, 1  ;;  %v1880_v51 = vld [vmem:[%s2570_s1 + $0x108] sm:$0xff]   ;;  %v302_v6 = vrot.slane %v2129_v58, 1  ;;  %v2181_v17 = vld [vmem:[%s2012_s10 + $0x58] sm:$0xff]  ;;  %v2224_v32 = vld [vmem:[%s2012_s10 + $0x80] sm:$0xff]  ;;  %v1151_v0 = vrot.slane %v2097_v46, 3 }
  0x19   : > { %419 = vmatpush1.bf16.msra.mxu0 %v1854_v7  ;;  %625 = vmatpush1.bf16.msra.mxu1 %v1855_v8  ;;  %v301_v47 = vsel %vm291_vm1, %v296_v20, %v300_v38  ;;  %v2113_v53 = vld [vmem:[%s2012_s10 + $0x48] sm:$0xff]  ;;  %v305_v59 = vsel %vm291_vm1, %v300_v38, %v304_v52  ;;  %v815_v5 = vrot.slane %v2134_v60, 2  ;;  %v1730_v7 = vcombine.low %v2151_v2, %v2028_v15 }
  0x1a   : > { %420 = vmatprep.subr.bf16.mxu0 %v1938_v1  ;;  %626 = vmatprep.subr.bf16.mxu1 %v1938_v1  ;;  %v299_v55 = vsel %vm291_vm1, %v293_v35, %v298_v49  ;;  %v2141_v62 = vcombine.high %v2113_v53, %v2118_v54  ;;  %v1731_v8 = vcombine.high %v2151_v2, %v2028_v15  ;;  %v814_v13 = vrot.slane %v1679_v3, 2  ;;  %v2188_v20 = vld [vmem:[%s2012_s10 + $0x68] sm:$0xff]  ;;  %v1898_v35 = vld [vmem:[%s2570_s1 + $0xf0] sm:$0xff]  }
  0x1b   : > { %v2205_v25 = vcombine.high %v184_v18, %v2188_v20  ;;  %v1893_v29 = vld [vmem:[%s2570_s1 + $0xa8] sm:$0xff]   ;;  %v2218_v30 = vcombine.high %v2181_v17, %v184_v18  ;;  %v2221_v31 = vcombine.low %v184_v18, %v2188_v20  ;;  %v1143_v14 = vrot.slane %v1730_v7, 3 }
  0x1c   : > { %v729_v34 = vld [vmem:[%s2012_s10 + $0x88] sm:$0x33]  ;;  %v1155_v46 = vrot.slane %v2141_v62, 3 }
  0x1d   : > { %421 = vmatpush1.bf16.msra.mxu0 %v1856_v9  ;;  %627 = vmatpush1.bf16.msra.mxu1 %v1857_v10  ;;  %v308_v9 = vrot.slane %v2141_v62, 1  ;;  %v1889_v10 = vld [vmem:[%s2570_s1 + $0xb0] sm:$0xff]  }
  0x1e   : > { %422 = vmatprep.subr.bf16.mxu0 %v1938_v1  ;;  %628 = vmatprep.subr.bf16.mxu1 %v1938_v1  ;;  %v2233_v38 = vld [vmem:[%s2012_s10 + $0x88] ss:$8 sps:$4 sm:$0x7f]  }
  0x1f   : > { %v309_v26 = vsel %vm291_vm1, %v304_v52, %v308_v9  ;;  %v1693_v52 = vcombine.low %v2224_v32, %v729_v34 }
  0x21   : > { %423 = vmatpush1.bf16.msra.mxu0 %v1858_v11  ;;  %629 = vmatpush1.bf16.msra.mxu1 %v1859_v12  ;;  %v2171_v11 = vld [vmem:[%s2012_s10 + $0x70] sm:$0xff]  ;;  %v2174_v12 = vld [vmem:[%s2012_s10 + $0x78] sm:$0xff]  ;;  %v2274_v3 = vrot.slane %v1693_v52, 2 }
  0x22   : > { %424 = vmatprep.subr.bf16.mxu0 %v1938_v1  ;;  %630 = vmatprep.subr.bf16.mxu1 %v1938_v1  ;;  %v1692_v19 = vcombine.high %v2171_v11, %v2174_v12  ;;  %v1691_v22 = vcombine.low %v2171_v11, %v2174_v12 }
  0x25   : > { %425 = vmatpush1.bf16.msra.mxu0 %v1860_v21  ;;  %631 = vmatpush1.bf16.msra.mxu1 %v1861_v23  ;;  %v2193_v21 = vsel %vm408_vm2, %v814_v13, %v815_v5  ;;  %v303_v23 = vsel %vm291_vm1, %v298_v49, %v302_v6  ;;  %v1899_v49 = vld [vmem:[%s2570_s1 + $0xa0] sm:$0xff]   ;;  %v2281_v13 = vcombine.high %v2081_v40, %v2113_v53 }
  0x26   : > { %426 = vmatprep.subr.bf16.mxu0 %v1938_v1  ;;  %632 = vmatprep.subr.bf16.mxu1 %v1938_v1 }
  0x27   : > { %v826_v2 = vrot.slane %v2281_v13, 2 }
  0x29   : > { %427 = vmatpush1.bf16.msra.mxu0 %v1862_v24  ;;  %633 = vmatpush1.bf16.msra.mxu1 %v1863_v28  ;;  %v2202_v24 = vcombine.low %v2113_v53, %v2118_v54  ;;  %v2212_v28 = vcombine.high %v2053_v27, %v2078_v39 }
  0x2a   : > { %442 = vmatprep.subr.bf16.mxu0 %v1938_v1  ;;  %648 = vmatprep.subr.bf16.mxu1 %v1938_v1 }
  0x2b   : > { %v1153_v62 = vrot.slane %v2202_v24, 3 }
  0x2d   : > { %443 = vmatpush2.bf16.msra.mxu0 %v410_v36  ;;  %649 = vmatpush2.bf16.msra.mxu1 %v616_v37  ;;  %v834_v36 = vrot.slane %v2205_v25, 2  ;;  %v838_v37 = vrot.slane %v1692_v19, 2 }
  0x2e   : > { %932 = vmatprep.subr.bf16.mxu0 %v1938_v1  ;;  %1261 = vmatprep.subr.bf16.mxu1 %v1938_v1 }
  0x30   : > { %445 = vmatmul.mubr.bf16.vlgmr.msra.gmra.mxu0 %v294_v42  ;;  %651 = vmatmul.mubr.bf16.vlgmr.msra.gmra.mxu1 %v1868_v41  ;;  %v832_v41 = vrot.slane %v2221_v31, 2  ;;  %v836_v42 = vrot.slane %v1691_v22, 2 }
  0x31   : > { %933 = vmatpush1.bf16.msra.mxu0 %v1873_v43  ;;  %1262 = vmatpush1.bf16.msra.mxu1 %v1874_v45  ;;  %v306_v43 = vrot.slane %v2202_v24, 1  ;;  %v2243_v45 = vsel %vm408_vm2, %v834_v36, %v838_v37 }
  0x32   : > { %1621 = vmatprep.mubr.msk.bf16.mxu0 %vm383_vm0, %v301_v47  ;;  %1654 = vmatprep.mubr.msk.bf16.mxu1 %vm383_vm0, %v1631_v48  ;;  %v1742_v47 = vcombine.low %v2174_v12, %v2224_v32  ;;  %v312_v48 = vrot.slane %v2218_v30, 1  ;;  %v2308_v22 = vsel %vm408_vm2, %v836_v42, %v2274_v3 }
  0x33   : > { %934 = vmatprep.subr.bf16.mxu0 %v1938_v1  ;;  %1263 = vmatprep.subr.bf16.mxu1 %v1938_v1 }
  0x35   : > { %935 = vmatpush1.bf16.msra.mxu0 %v1879_v50  ;;  %1264 = vmatpush1.bf16.msra.mxu1 %v1880_v51  ;;  %v2256_v50 = vsel %vm408_vm2, %v832_v41, %v836_v42  ;;  %v1694_v51 = vcombine.high %v2224_v32, %v729_v34  ;;  %v207_v34 = vld [vmem:[%s2012_s10 + $0x80] sm:$0x11]  ;;  %v1916_v42 = vld [vmem:[%s2570_s1 + $0x118] sm:$0x3f]  }
  0x36   : > { %936 = vmatprep.subr.bf16.mxu0 %v1938_v1  ;;  %1265 = vmatprep.subr.bf16.mxu1 %v1938_v1 }
  0x38   : > { %453 = vmatmul.mubr.bf16.gmra.mxu0 %v299_v55  ;;  %659 = vmatmul.mubr.bf16.gmra.mxu1 %v1630_v56  ;;  %v1902_v55 = vld [vmem:[%s2570_s1 + $0xe8] sm:$0xff]   ;;  %v2264_v56 = vrot.slane %v1742_v47, 3 }
  0x39   : > { %1622 = vmatprep.mubr.msk.bf16.mxu0 %vm383_vm0, %v305_v59  ;;  %1655 = vmatprep.mubr.msk.bf16.mxu1 %vm383_vm0, %v2125_v57  ;;  %v1169_v59 = vrot.slane %v2233_v38, 3 }
  0x3a   : > { %937 = vmatpush1.bf16.msra.mxu0 %v1885_v61  ;;  %1266 = vmatpush1.bf16.msra.mxu1 %v1886_v63  ;;  %v2269_v61 = vcombine.low %v2053_v27, %v2078_v39  ;;  %v2272_v63 = vrot.slane %v1694_v51, 2  ;;  %v313_v39 = vsel %vm291_vm1, %v308_v9, %v312_v48  ;;  %v1906_v9 = vld [vmem:[%s2570_s1 + $0xe0] sm:$0xff]   ;;  %v2343_v51 = vcombine.low %v2188_v20, %v2171_v11 }
  0x3b   : > { %938 = vmatprep.subr.bf16.mxu0 %v1938_v1  ;;  %1267 = vmatprep.subr.bf16.mxu1 %v1938_v1  ;;  %v2290_v27 = vsel %vm1142_vm3, %v2264_v56, %v1169_v59 }
  0x3c   : > { %v2304_v19 = vsel %vm408_vm2, %v838_v37, %v2272_v63  ;;  %v1915_v37 = vld [vmem:[%s2570_s1 + $0xd0] sm:$0x3f]   ;;  %v820_v15 = vrot.slane %v2269_v61, 2 }
  0x3e   : > { %939 = vmatpush1.bf16.msra.mxu0 %v1889_v10  ;;  %1268 = vmatpush1.bf16.msra.mxu1 %v1892_v16  ;;  %v307_v10 = vsel %vm291_vm1, %v302_v6, %v306_v43  ;;  %v2284_v16 = vcombine.low %v2181_v17, %v184_v18  ;;  %v2297_v6 = vcombine.high %v2188_v20, %v2171_v11  ;;  %v1905_v18 = vld [vmem:[%s2570_s1 + $0x98] sm:$0xff]  }
  0x3f   : > { %940 = vmatprep.subr.bf16.mxu0 %v1938_v1  ;;  %1269 = vmatprep.subr.bf16.mxu1 %v1938_v1  ;;  %v821_v7 = vsel %vm408_vm2, %v815_v5, %v820_v15  ;;  %v1159_v5 = vrot.slane %v2218_v30, 3 }
  0x40   : > { %461 = vmatmul.mubr.bf16.gmra.mxu0 %v303_v23  ;;  %667 = vmatmul.mubr.bf16.gmra.mxu1 %v2134_v60  ;;  %v310_v23 = vrot.slane %v2284_v16, 1  ;;  %v1157_v24 = vrot.slane %v2284_v16, 3  ;;  %v1163_v30 = vrot.slane %v2297_v6, 3  ;;  %v1161_v16 = vrot.slane %v2343_v51, 3 }
  0x41   : > { %1623 = vmatprep.mubr.msk.bf16.mxu0 %vm383_vm0, %v309_v26  ;;  %1656 = vmatprep.mubr.msk.bf16.mxu1 %vm383_vm0, %v2212_v28  ;;  %v316_v26 = vrot.slane %v2297_v6, 1 }
  0x42   : > { %941 = vmatpush1.bf16.msra.mxu0 %v1893_v29  ;;  %1270 = vmatpush1.bf16.msra.mxu1 %v1898_v35  ;;  %v1911_v29 = vld [vmem:[%s2570_s1 + $0x90] sm:$0xff]   ;;  %v1912_v35 = vld [vmem:[%s2570_s1 + $0xd8] sm:$0xff]   ;;  %v311_v47 = vsel %vm291_vm1, %v306_v43, %v310_v23  ;;  %v930_v43 = vsel %vm408_vm2, %v1915_v37, 0 }
  0x43   : > { %942 = vmatprep.subr.bf16.mxu0 %v1938_v1  ;;  %1271 = vmatprep.subr.bf16.mxu1 %v1938_v1  ;;  %v317_v52 = vsel %vm291_vm1, %v312_v48, %v316_v26 }
  0x46   : > { %943 = vmatpush1.bf16.msra.mxu0 %v1899_v49  ;;  %1272 = vmatpush1.bf16.msra.mxu1 %v1902_v55  ;;  %v2339_v49 = vcombine.low %v2081_v40, %v2113_v53  ;;  %v2348_v55 = vcombine.high %v2118_v54, %v2181_v17  ;;  %v1259_v40 = vsel %vm408_vm2, %v1916_v42, 0  ;;  %v314_v53 = vrot.slane %v2343_v51, 1 }
  0x47   : > { %944 = vmatprep.subr.bf16.mxu0 %v1938_v1  ;;  %1273 = vmatprep.subr.bf16.mxu1 %v1938_v1 }
  0x48   : > { %469 = vmatmul.mubr.bf16.gmra.mxu0 %v307_v10  ;;  %675 = vmatmul.mubr.bf16.gmra.mxu1 %v2269_v61  ;;  %v1610_v10 = vcombine.high %v2174_v12, %v207_v34  ;;  %v315_v48 = vsel %vm291_vm1, %v310_v23, %v314_v53  ;;  %v1643_v23 = vcombine.high %v2171_v11, %v2171_v11  ;;  %v830_v60 = vrot.slane %v2348_v55, 2 }
  0x49   : > { %1624 = vmatprep.mubr.msk.bf16.mxu0 %vm383_vm0, %v313_v39  ;;  %1657 = vmatprep.mubr.msk.bf16.mxu1 %vm383_vm0, %v2281_v13  ;;  %v2363_v39 = vcombine.low %v2118_v54, %v2181_v17  ;;  %v817_v54 = vrot.slane %v1680_v4, 2  ;;  %v818_v17 = vrot.slane %v2125_v57, 2  ;;  %v1144_v57 = vrot.slane %v2089_v44, 3 }
  0x4a   : > { %945 = vmatpush1.bf16.msra.mxu0 %v1905_v18  ;;  %1274 = vmatpush1.bf16.msra.mxu1 %v1906_v9  ;;  %v320_v20 = vrot.slane %v1610_v10, 1  ;;  %v1149_v44 = vrot.slane %v2129_v58, 3  ;;  %v824_v58 = vrot.slane %v2339_v49, 2  ;;  %v1160_v10 = vsel %vm1142_vm3, %v1155_v46, %v1159_v5 }
  0x4b   : > { %946 = vmatprep.subr.bf16.mxu0 %v1938_v1  ;;  %1275 = vmatprep.subr.bf16.mxu1 %v1938_v1  ;;  %v819_v37 = vsel %vm408_vm2, %v817_v54, %v818_v17  ;;  %v1145_v4 = vsel %vm1142_vm3, %v1143_v14, %v1144_v57 }
  0x4c   : > { %v321_v18 = vsel %vm291_vm1, %v316_v26, %v320_v20  ;;  %v1146_v26 = vrot.slane %v1731_v8, 3  ;;  %v825_v61 = vsel %vm408_vm2, %v820_v15, %v824_v58  ;;  %v1154_v13 = vsel %vm1142_vm3, %v1149_v44, %v1153_v62 }
  0x4e   : > { %947 = vmatpush1.bf16.msra.mxu0 %v1911_v29  ;;  %1276 = vmatpush1.bf16.msra.mxu1 %v1912_v35  ;;  %v1642_v35 = vcombine.low %v2171_v11, %v2171_v11 }
  0x4f   : > { %962 = vmatprep.subr.bf16.mxu0 %v1938_v1  ;;  %1291 = vmatprep.subr.bf16.mxu1 %v1938_v1  ;;  %v1609_v1 = vcombine.low %v2174_v12, %v207_v34  ;;  %v1147_v34 = vrot.slane %v2070_v33, 3  ;;  %v822_v33 = vrot.slane %v2212_v28, 2  ;;  %v1150_v28 = vsel %vm1142_vm3, %v1144_v57, %v1149_v44 }
  0x50   : > { %477 = vmatmul.mubr.bf16.gmra.mxu0 %v311_v47  ;;  %683 = vmatmul.mubr.bf16.gmra.mxu1 %v2339_v49  ;;  %v1156_v47 = vsel %vm1142_vm3, %v1151_v0, %v1155_v46  ;;  %v828_v49 = vrot.slane %v2363_v39, 2 }
  0x51   : > { %1625 = vmatprep.mubr.msk.bf16.mxu0 %vm383_vm0, %v317_v52  ;;  %1658 = vmatprep.mubr.msk.bf16.mxu1 %vm383_vm0, %v2348_v55  ;;  %v318_v9 = vrot.slane %v1609_v1, 1  ;;  %v1148_v42 = vsel %vm1142_vm3, %v1146_v26, %v1147_v34  ;;  %v823_v8 = vsel %vm408_vm2, %v818_v17, %v822_v33  ;;  %v1152_v11 = vsel %vm1142_vm3, %v1147_v34, %v1151_v0 }
  0x52   : > { %963 = vmatpush2.bf16.msra.mxu0 %v930_v43  ;;  %1292 = vmatpush2.bf16.msra.mxu1 %v1259_v40  ;;  %v831_v52 = vsel %vm408_vm2, %v826_v2, %v830_v60  ;;  %v829_v55 = vsel %vm408_vm2, %v824_v58, %v828_v49  ;;  %v1158_v43 = vsel %vm1142_vm3, %v1153_v62, %v1157_v24 }
  0x53   : > { %v319_v29 = vsel %vm291_vm1, %v314_v53, %v318_v9  ;;  %v835_v40 = vsel %vm408_vm2, %v830_v60, %v834_v36  ;;  %v1164_v53 = vsel %vm1142_vm3, %v1159_v5, %v1163_v30  ;;  %v1162_v36 = vsel %vm1142_vm3, %v1157_v24, %v1161_v16 }
  0x58   : > { %485 = vmatmul.mubr.bf16.gmra.mxu0 %v315_v48  ;;  %691 = vmatmul.mubr.bf16.gmra.mxu1 %v2363_v39  ;;  %v1926_v39 = vld [vmem:[%s2012_s10 + $0x8c] ss:$8 sps:$4 sm:$0x7f]  }
  0x59   : > { %1626 = vmatprep.mubr.msk.bf16.mxu0 %vm383_vm0, %v321_v18  ;;  %1659 = vmatprep.mubr.msk.bf16.mxu1 %vm383_vm0, %v2205_v25  ;;  %v833_v25 = vsel %vm408_vm2, %v828_v49, %v832_v41 }
  0x60   : > { %493 = vmatmul.mubr.bf16.gmra.mxu0 %v319_v29  ;;  %699 = vmatmul.mubr.bf16.gmra.mxu1 %v2221_v31 }
  0x61   : > { %1627 = vmatprep.mubr.msk.bf16.mxu0 %vm383_vm0, %v320_v20  ;;  %1660 = vmatprep.mubr.msk.bf16.mxu1 %vm383_vm0, %v1643_v23  ;;  %v1743_v20 = vcombine.high %v2174_v12, %v2224_v32  ;;  %v1171_v12 = vrot.slane %v1926_v39, 3  ;;  %v1166_v32 = vsel %vm1142_vm3, %v1161_v16, %v2264_v56 }
  0x63   : > { %v1167_v6 = vrot.slane %v1743_v20, 3 }
  0x65   : > { %v1168_v48 = vsel %vm1142_vm3, %v1163_v30, %v1167_v6  ;;  %v1172_v31 = vsel %vm1142_vm3, %v1167_v6, %v1171_v12 }
  0x68   : > { %501 = vmatmul.mubr.bf16.gmra.mxu0 %v318_v9  ;;  %707 = vmatmul.mubr.bf16.gmra.mxu1 %v1642_v35 }
  0x69   : > { %1704 = vmatprep.mubr.msk.bf16.mxu0 %vm383_vm0, %v819_v37  ;;  %1755 = vmatprep.mubr.msk.bf16.mxu1 %vm383_vm0, %v1148_v42 }
  0x70   : > { %965 = vmatmul.mubr.bf16.vlgmr.msra.gmra.mxu0 %v2193_v21  ;;  %1294 = vmatmul.mubr.bf16.vlgmr.msra.gmra.mxu1 %v1145_v4  ;;  %v827_v21 = vsel %vm408_vm2, %v822_v33, %v826_v2 }
  0x71   : > { %1705 = vmatprep.mubr.msk.bf16.mxu0 %vm383_vm0, %v823_v8  ;;  %1756 = vmatprep.mubr.msk.bf16.mxu1 %vm383_vm0, %v1152_v11 }
  0x78   : > { %973 = vmatmul.mubr.bf16.gmra.mxu0 %v821_v7  ;;  %1302 = vmatmul.mubr.bf16.gmra.mxu1 %v1150_v28 }
  0x79   : > { %1706 = vmatprep.mubr.msk.bf16.mxu0 %vm383_vm0, %v827_v21  ;;  %1757 = vmatprep.mubr.msk.bf16.mxu1 %vm383_vm0, %v1156_v47 }
  0x80   : > { %981 = vmatmul.mubr.bf16.gmra.mxu0 %v825_v61  ;;  %1310 = vmatmul.mubr.bf16.gmra.mxu1 %v1154_v13 }
  0x81   : > { %1707 = vmatprep.mubr.msk.bf16.mxu0 %vm383_vm0, %v831_v52  ;;  %1758 = vmatprep.mubr.msk.bf16.mxu1 %vm383_vm0, %v1160_v10 }
  0x88   : > { %989 = vmatmul.mubr.bf16.gmra.mxu0 %v829_v55  ;;  %1318 = vmatmul.mubr.bf16.gmra.mxu1 %v1158_v43 }
  0x89   : > { %1708 = vmatprep.mubr.msk.bf16.mxu0 %vm383_vm0, %v835_v40  ;;  %1759 = vmatprep.mubr.msk.bf16.mxu1 %vm383_vm0, %v1164_v53 }
  0x90   : > { %997 = vmatmul.mubr.bf16.gmra.mxu0 %v833_v25  ;;  %1326 = vmatmul.mubr.bf16.gmra.mxu1 %v1162_v36 }
  0x91   : > { %1709 = vmatprep.mubr.msk.bf16.mxu0 %vm383_vm0, %v2243_v45  ;;  %1760 = vmatprep.mubr.msk.bf16.mxu1 %vm383_vm0, %v1168_v48 }
  0x98   : > { %1005 = vmatmul.mubr.bf16.gmra.mxu0 %v2256_v50  ;;  %1334 = vmatmul.mubr.bf16.gmra.mxu1 %v1166_v32 }
  0x99   : > { %1710 = vmatprep.mubr.msk.bf16.mxu0 %vm383_vm0, %v2304_v19  ;;  %1761 = vmatprep.mubr.msk.bf16.mxu1 %vm383_vm0, %v1172_v31 }
  0xa0   : > { %1013 = vmatmul.mubr.bf16.gmra.mxu0 %v2308_v22  ;;  %1342 = vmatmul.mubr.bf16.gmra.mxu1 %v2290_v27 }
  0xa1   : > { %1711 = vmatprep.mubr.msk.bf16.mxu0 %vm383_vm0, %v2272_v63  ;;  %1762 = vmatprep.mubr.msk.bf16.mxu1 %vm383_vm0, %v1171_v12 }
  0xa8   : > { %1021 = vmatmul.mubr.bf16.gmra.mxu0 %v2274_v3  ;;  %1350 = vmatmul.mubr.bf16.gmra.mxu1 %v1169_v59 }
  0xf0   : > { %v446_v41 = vpop.f32.mrf.mxu0  ;;  %v652_v45 = vpop.f32.mrf.mxu1 }
  0xf1   : > { %v2463_v50 = vadd.f32 %v652_v45, %v446_v41 }
  0xf2   : > { %v448_v56 = vpop.f32.mrf.mxu0  ;;  %v654_v19 = vpop.f32.mrf.mxu1 }
  0xf4   : > { %v2465_v51 = vpop.f32.mrf.mxu0  ;;  %v2467_v22 = vpop.f32.mrf.mxu1 }
  0xf6   : > { %v451_v27 = vpop.f32.mrf.mxu0  ;;  %v657_v1 = vpop.f32.mrf.mxu1 }
  0xf8   : > { %v454_v63 = vpop.f32.mrf.mxu0  ;;  %v660_v18 = vpop.f32.mrf.mxu1 }
  0xf9   : > { %v2469_v9 = vadd.f32 %v660_v18, %v454_v63 }
  0xfa   : > { %v456_v3 = vpop.f32.mrf.mxu0  ;;  %v662_v29 = vpop.f32.mrf.mxu1 }
  0xfc   : > { %v2471_v38 = vpop.f32.mrf.mxu0  ;;  %v2473_v59 = vpop.f32.mrf.mxu1 }
  0xfe   : > { %v459_v23 = vpop.f32.mrf.mxu0  ;;  %v665_v54 = vpop.f32.mrf.mxu1 }
  0xff   : > { %v2513_v23 = vld [vmem:[%s2571_s2] ss:$0 sm:$0xff] }
 0x100   : > { %v462_v17 = vpop.f32.mrf.mxu0  ;;  %v668_v26 = vpop.f32.mrf.mxu1 }
 0x101   : > { %v2475_v34 = vadd.f32 %v668_v26, %v462_v17  ;;  %v656_v17 = vadd.f32 %v2467_v22, %v2465_v51  ;;  %v664_v22 = vadd.f32 %v2473_v59, %v2471_v38 }
 0x102   : > { %v464_v35 = vpop.f32.mrf.mxu0  ;;  %v670_v37 = vpop.f32.mrf.mxu1 }
 0x104   : > { %v2477_v42 = vpop.f32.mrf.mxu0  ;;  %v2479_v14 = vpop.f32.mrf.mxu1 }
 0x106   : > { %v467_v57 = vpop.f32.mrf.mxu0  ;;  %v673_v33 = vpop.f32.mrf.mxu1 }
 0x108   : > { %v470_v0 = vpop.f32.mrf.mxu0  ;;  %v676_v4 = vpop.f32.mrf.mxu1 }
 0x109   : > { %v2481_v8 = vadd.f32 %v676_v4, %v470_v0 }
 0x10a   : > { %v472_v11 = vpop.f32.mrf.mxu0  ;;  %v678_v15 = vpop.f32.mrf.mxu1 }
 0x10c   : > { %v2483_v44 = vpop.f32.mrf.mxu0  ;;  %v2485_v2 = vpop.f32.mrf.mxu1 }
 0x10e   : > { %v475_v46 = vpop.f32.mrf.mxu0  ;;  %v681_v7 = vpop.f32.mrf.mxu1 }
 0x110   : > { %v478_v28 = vpop.f32.mrf.mxu0  ;;  %v684_v21 = vpop.f32.mrf.mxu1 }
 0x111   : > { %v2487_v47 = vadd.f32 %v684_v21, %v478_v28 }
 0x112   : > { %v480_v58 = vpop.f32.mrf.mxu0  ;;  %v686_v62 = vpop.f32.mrf.mxu1 }
 0x114   : > { %v2489_v60 = vpop.f32.mrf.mxu0  ;;  %v2491_v5 = vpop.f32.mrf.mxu1 }
 0x116   : > { %v483_v61 = vpop.f32.mrf.mxu0  ;;  %v689_v13 = vpop.f32.mrf.mxu1 }
 0x118   : > { %v486_v52 = vpop.f32.mrf.mxu0  ;;  %v692_v10 = vpop.f32.mrf.mxu1 }
 0x119   : > { %v2493_v49 = vadd.f32 %v692_v10, %v486_v52 }
 0x11a   : > { %v488_v24 = vpop.f32.mrf.mxu0  ;;  %v694_v30 = vpop.f32.mrf.mxu1 }
 0x11c   : > { %v2495_v55 = vpop.f32.mrf.mxu0  ;;  %v2497_v43 = vpop.f32.mrf.mxu1 }
 0x11e   : > { %v491_v40 = vpop.f32.mrf.mxu0  ;;  %v697_v53 = vpop.f32.mrf.mxu1 }
 0x120   : > { %v494_v20 = vpop.f32.mrf.mxu0  ;;  %v700_v16 = vpop.f32.mrf.mxu1 }
 0x121   : > { %v2499_v6 = vadd.f32 %v700_v16, %v494_v20 }
 0x122   : > { %v496_v25 = vpop.f32.mrf.mxu0  ;;  %v702_v36 = vpop.f32.mrf.mxu1 }
 0x124   : > { %v2501_v48 = vpop.f32.mrf.mxu0  ;;  %v2503_v39 = vpop.f32.mrf.mxu1 }
 0x126   : > { %v499_v12 = vpop.f32.mrf.mxu0  ;;  %v705_v32 = vpop.f32.mrf.mxu1 }
 0x128   : > { %v2505_v31 = vpop.f32.mrf.mxu0  ;;  %v2507_v41 = vpop.f32.mrf.mxu1 }
 0x12a   : > { %v504_v45 = vpop.f32.mrf.mxu0  ;;  %v710_v56 = vpop.f32.mrf.mxu1 }
 0x12b   : > { %v672_v45 = vadd.f32 %v2479_v14, %v2477_v42 }
 0x12c   : > { %v505_v19 = vpop.f32.mrf.mxu0  ;;  %v711_v27 = vpop.f32.mrf.mxu1 }
 0x12e   : > { %v506_v1 = vpop.f32.mrf.mxu0  ;;  %v712_v63 = vpop.f32.mrf.mxu1 }
 0x130   : > { %v966_v18 = vpop.f32.mrf.mxu0  ;;  %v1295_v29 = vpop.f32.mrf.mxu1 }
 0x131   : > { %v1028_v3 = vadd.f32 %v966_v18, %v2463_v50 }
 0x132   : > { %v968_v54 = vpop.f32.mrf.mxu0  ;;  %v1297_v35 = vpop.f32.mrf.mxu1 }
 0x133   : > { %v1357_v26 = vadd.f32 %v1295_v29, %v1028_v3 }
 0x134   : > { %v969_v37 = vpop.f32.mrf.mxu0  ;;  %v1298_v0 = vpop.f32.mrf.mxu1 }
 0x135   : > { %v1379_v57 = vadd.f32 %v2513_v23, %v1357_v26  ;;  %v1029_v33 = vadd.f32 %v969_v37, %v656_v17 }
 0x136   : > { %v971_v4 = vpop.f32.mrf.mxu0  ;;  %v1300_v11 = vpop.f32.mrf.mxu1 }
 0x137   : > { %v1358_v50 = vadd.f32 %v1298_v0, %v1029_v33  ;;  %v1409_v46 = vmul.f32 1.9572, %v1379_v57  ;;  %vm1394_vm4 = vcmp.gt.f32.partialorder %v1379_v57, 0.0  ;;  %v680_v4 = vadd.f32 %v2485_v2, %v2483_v44 }
 0x138   : > { %v974_v15 = vpop.f32.mrf.mxu0  ;;  %v1303_v21 = vpop.f32.mrf.mxu1 }
 0x139   : > { %v1380_v7 = vadd.f32 %v2513_v23, %v1358_v50  ;;  %v1030_v28 = vadd.f32 %v974_v15, %v2469_v9  ;;  %v1424_v52 = vsel %vm1394_vm4, %v1379_v57, %v1409_v46 }
 0x13a   : > { %v976_v51 = vpop.f32.mrf.mxu0  ;;  %v1305_v61 = vpop.f32.mrf.mxu1 }
 0x13b   : > { %vm1395_vm5 = vcmp.gt.f32.partialorder %v1380_v7, 0.0  ;;  %v1410_v58 = vmul.f32 1.9572, %v1380_v7  ;;  %v1359_v62 = vadd.f32 %v1303_v21, %v1030_v28 }
 0x13c   : > { %v977_v13 = vpop.f32.mrf.mxu0  ;;  %v1306_v30 = vpop.f32.mrf.mxu1 }
 0x13d   : > { %v1425_v10 = vsel %vm1395_vm5, %v1380_v7, %v1410_v58  ;;  %v1381_v9 = vadd.f32 %v2513_v23, %v1359_v62  ;;  %v1031_v24 = vadd.f32 %v977_v13, %v664_v22 }
 0x13e   : > { %v1799_v40 = vpack.c.bf16 %v1425_v10, %v1424_v52  ;;  %v979_v53 = vpop.f32.mrf.mxu0  ;;  %v1308_v59 = vpop.f32.mrf.mxu1 }
 0x13f   : > { %v1360_v38 = vadd.f32 %v1306_v30, %v1031_v24  ;;  %v1411_v16 = vmul.f32 1.9572, %v1381_v9  ;;  %vm1396_vm6 = vcmp.gt.f32.partialorder %v1381_v9, 0.0  ;;  %v688_v24 = vadd.f32 %v2491_v5, %v2489_v60 }
 0x140   : > { %1800 = vst [vmem:[%s2526_s13] sm:$0xff] %v1799_v40   ;;  %v982_v20 = vpop.f32.mrf.mxu0  ;;  %v1311_v12 = vpop.f32.mrf.mxu1 }
 0x141   : > { %v1382_v25 = vadd.f32 %v2513_v23, %v1360_v38  ;;  %v1032_v36 = vadd.f32 %v982_v20, %v2475_v34  ;;  %v1426_v63 = vsel %vm1396_vm6, %v1381_v9, %v1411_v16 }
 0x142   : > { %v984_v32 = vpop.f32.mrf.mxu0  ;;  %v1313_v27 = vpop.f32.mrf.mxu1 }
 0x143   : > { %vm1397_vm7 = vcmp.gt.f32.partialorder %v1382_v25, 0.0  ;;  %v1412_v56 = vmul.f32 1.9572, %v1382_v25  ;;  %v1361_v19 = vadd.f32 %v1311_v12, %v1032_v36 }
 0x144   : > { %v985_v1 = vpop.f32.mrf.mxu0  ;;  %v1314_v54 = vpop.f32.mrf.mxu1 }
 0x145   : > { %v1427_v18 = vsel %vm1397_vm7, %v1382_v25, %v1412_v56  ;;  %v1383_v3 = vadd.f32 %v2513_v23, %v1361_v19  ;;  %v1033_v29 = vadd.f32 %v985_v1, %v672_v45 }
 0x146   : > { %v1804_v17 = vpack.c.bf16 %v1427_v18, %v1426_v63  ;;  %v987_v34 = vpop.f32.mrf.mxu0  ;;  %v1316_v35 = vpop.f32.mrf.mxu1  ;;  %v696_v63 = vadd.f32 %v2497_v43, %v2495_v55 }
 0x147   : > { %v1362_v26 = vadd.f32 %v1314_v54, %v1033_v29  ;;  %v1413_v57 = vmul.f32 1.9572, %v1383_v3  ;;  %vm1398_vm8 = vcmp.gt.f32.partialorder %v1383_v3, 0.0 }
 0x148   : > { %1831 = vst [vmem:[%s2526_s13 + $0x8] sm:$0xff] %v1804_v17   ;;  %v990_v37 = vpop.f32.mrf.mxu0  ;;  %v1319_v33 = vpop.f32.mrf.mxu1 }
 0x149   : > { %v1384_v42 = vadd.f32 %v2513_v23, %v1362_v26  ;;  %v1034_v14 = vadd.f32 %v990_v37, %v2481_v8  ;;  %v1428_v7 = vsel %vm1398_vm8, %v1383_v3, %v1413_v57 }
 0x14a   : > { %v992_v0 = vpop.f32.mrf.mxu0  ;;  %v1321_v15 = vpop.f32.mrf.mxu1 }
 0x14b   : > { %vm1399_vm9 = vcmp.gt.f32.partialorder %v1384_v42, 0.0  ;;  %v1414_v50 = vmul.f32 1.9572, %v1384_v42  ;;  %v1363_v11 = vadd.f32 %v1319_v33, %v1034_v14 }
 0x14c   : > { %v993_v46 = vpop.f32.mrf.mxu0  ;;  %v1322_v22 = vpop.f32.mrf.mxu1 }
 0x14d   : > { %v1429_v28 = vsel %vm1399_vm9, %v1384_v42, %v1414_v50  ;;  %v1385_v21 = vadd.f32 %v2513_v23, %v1363_v11  ;;  %v1035_v51 = vadd.f32 %v993_v46, %v680_v4  ;;  %v704_v11 = vadd.f32 %v2503_v39, %v2501_v48 }
 0x14e   : > { %v1809_v58 = vpack.c.bf16 %v1429_v28, %v1428_v7  ;;  %v995_v8 = vpop.f32.mrf.mxu0  ;;  %v1324_v61 = vpop.f32.mrf.mxu1 }
 0x14f   : > { %v1364_v62 = vadd.f32 %v1322_v22, %v1035_v51  ;;  %v1415_v52 = vmul.f32 1.9572, %v1385_v21  ;;  %vm1400_vm10 = vcmp.gt.f32.partialorder %v1385_v21, 0.0  ;;  %v709_v61 = vadd.f32 %v2507_v41, %v2505_v31 }
 0x150   : > { %1832 = vst [vmem:[%s2526_s13 + $0x10] sm:$0xff] %v1809_v58   ;;  %v998_v13 = vpop.f32.mrf.mxu0  ;;  %v1327_v10 = vpop.f32.mrf.mxu1 }
 0x151   : > { %v1386_v44 = vadd.f32 %v2513_v23, %v1364_v62  ;;  %v1036_v2 = vadd.f32 %v998_v13, %v2487_v47  ;;  %v1430_v59 = vsel %vm1400_vm10, %v1385_v21, %v1415_v52 }
 0x152   : > { %v1000_v9 = vpop.f32.mrf.mxu0  ;;  %v1329_v53 = vpop.f32.mrf.mxu1 }
 0x153   : > { %vm1401_vm11 = vcmp.gt.f32.partialorder %v1386_v44, 0.0  ;;  %v1416_v30 = vmul.f32 1.9572, %v1386_v44  ;;  %v1365_v40 = vadd.f32 %v1327_v10, %v1036_v2 }
 0x154   : > { %v1001_v38 = vpop.f32.mrf.mxu0  ;;  %v1330_v36 = vpop.f32.mrf.mxu1 }
 0x155   : > { %v1431_v20 = vsel %vm1401_vm11, %v1386_v44, %v1416_v30  ;;  %v1387_v16 = vadd.f32 %v2513_v23, %v1365_v40  ;;  %v1037_v25 = vadd.f32 %v1001_v38, %v688_v24 }
 0x156   : > { %v1814_v12 = vpack.c.bf16 %v1431_v20, %v1430_v59  ;;  %v1003_v47 = vpop.f32.mrf.mxu0  ;;  %v1332_v45 = vpop.f32.mrf.mxu1 }
 0x157   : > { %v1366_v32 = vadd.f32 %v1330_v36, %v1037_v25  ;;  %v1417_v19 = vmul.f32 1.9572, %v1387_v16  ;;  %vm1402_vm12 = vcmp.gt.f32.partialorder %v1387_v16, 0.0 }
 0x158   : > { %1833 = vst [vmem:[%s2526_s13 + $0x18] sm:$0xff] %v1814_v12   ;;  %v1006_v56 = vpop.f32.mrf.mxu0  ;;  %v1335_v27 = vpop.f32.mrf.mxu1 }
 0x159   : > { %v1388_v60 = vadd.f32 %v2513_v23, %v1366_v32  ;;  %v1038_v5 = vadd.f32 %v1006_v56, %v2493_v49  ;;  %v1432_v17 = vsel %vm1402_vm12, %v1387_v16, %v1417_v19 }
 0x15a   : > { %v1008_v1 = vpop.f32.mrf.mxu0  ;;  %v1337_v29 = vpop.f32.mrf.mxu1 }
 0x15b   : > { %vm1403_vm13 = vcmp.gt.f32.partialorder %v1388_v60, 0.0  ;;  %v1418_v18 = vmul.f32 1.9572, %v1388_v60  ;;  %v1367_v3 = vadd.f32 %v1335_v27, %v1038_v5 }
 0x15c   : > { %v1009_v54 = vpop.f32.mrf.mxu0  ;;  %v1338_v37 = vpop.f32.mrf.mxu1 }
 0x15d   : > { %v1433_v34 = vsel %vm1403_vm13, %v1388_v60, %v1418_v18  ;;  %v1389_v26 = vadd.f32 %v2513_v23, %v1367_v3  ;;  %v1039_v35 = vadd.f32 %v1009_v54, %v696_v63 }
 0x15e   : > { %v1819_v57 = vpack.c.bf16 %v1433_v34, %v1432_v17  ;;  %v1011_v49 = vpop.f32.mrf.mxu0  ;;  %v1340_v14 = vpop.f32.mrf.mxu1 }
 0x15f   : > { %v1368_v42 = vadd.f32 %v1338_v37, %v1039_v35  ;;  %v1419_v0 = vmul.f32 1.9572, %v1389_v26  ;;  %vm1404_vm14 = vcmp.gt.f32.partialorder %v1389_v26, 0.0 }
 0x160   : > { %1834 = vst [vmem:[%s2526_s13 + $0x20] sm:$0xff] %v1819_v57   ;;  %v1014_v33 = vpop.f32.mrf.mxu0  ;;  %v1343_v4 = vpop.f32.mrf.mxu1 }
 0x161   : > { %v1390_v55 = vadd.f32 %v2513_v23, %v1368_v42  ;;  %v1040_v43 = vadd.f32 %v1014_v33, %v2499_v6  ;;  %v1434_v21 = vsel %vm1404_vm14, %v1389_v26, %v1419_v0 }
 0x162   : > { %v1016_v50 = vpop.f32.mrf.mxu0  ;;  %v1345_v7 = vpop.f32.mrf.mxu1 }
 0x163   : > { %vm1405_vm15 = vcmp.gt.f32.partialorder %v1390_v55, 0.0  ;;  %v1420_v15 = vmul.f32 1.9572, %v1390_v55  ;;  %v1369_v46 = vadd.f32 %v1343_v4, %v1040_v43 }
 0x164   : > { %v1017_v28 = vpop.f32.mrf.mxu0  ;;  %v1346_v8 = vpop.f32.mrf.mxu1 }
 0x165   : > { %v1435_v51 = vsel %vm1405_vm15, %v1390_v55, %v1420_v15  ;;  %v1391_v22 = vadd.f32 %v2513_v23, %v1369_v46  ;;  %v1041_v58 = vadd.f32 %v1017_v28, %v704_v11 }
 0x166   : > { %v1824_v62 = vpack.c.bf16 %v1435_v51, %v1434_v21  ;;  %v1019_v6 = vpop.f32.mrf.mxu0  ;;  %v1348_v52 = vpop.f32.mrf.mxu1 }
 0x167   : > { %v1370_v13 = vadd.f32 %v1346_v8, %v1041_v58  ;;  %v1421_v39 = vmul.f32 1.9572, %v1391_v22  ;;  %vm1406_vm0 = vcmp.gt.f32.partialorder %v1391_v22, 0.0 }
 0x168   : > { %1835 = vst [vmem:[%s2526_s13 + $0x28] sm:$0xff] %v1824_v62   ;;  %v1022_v48 = vpop.f32.mrf.mxu0  ;;  %v1351_v10 = vpop.f32.mrf.mxu1 }
 0x169   : > { %v1392_v44 = vadd.f32 %v2513_v23, %v1370_v13  ;;  %v1042_v2 = vadd.f32 %v1022_v48, %v709_v61  ;;  %v1436_v38 = vsel %vm1406_vm0, %v1391_v22, %v1421_v39 }
 0x16a   : > { %v1024_v9 = vpop.f32.mrf.mxu0  ;;  %v1353_v40 = vpop.f32.mrf.mxu1 }
 0x16b   : > { %vm1407_vm1 = vcmp.gt.f32.partialorder %v1392_v44, 0.0  ;;  %v1422_v24 = vmul.f32 1.9572, %v1392_v44  ;;  %v1371_v30 = vadd.f32 %v1351_v10, %v1042_v2 }
 0x16c   : > { %v1025_v53 = vpop.f32.mrf.mxu0  ;;  %v1354_v59 = vpop.f32.mrf.mxu1 }
 0x16d   : > { %v1437_v31 = vsel %vm1407_vm1, %v1392_v44, %v1422_v24  ;;  %v1393_v41 = vadd.f32 %v2513_v23, %v1371_v30 }
 0x16e   : > { %v1829_v20 = vpack.c.bf16 %v1437_v31, %v1436_v38  ;;  %v1026_v16 = vpop.f32.mrf.mxu0  ;;  %v1355_v36 = vpop.f32.mrf.mxu1 }
 0x16f   : > { %vm1408_vm2 = vcmp.gt.f32.partialorder %v1393_v41, 0.0  ;;  %v1423_v25 = vmul.f32 1.9572, %v1393_v41 }
 0x170   : > { %1836 = vst [vmem:[%s2526_s13 + $0x30] sm:$0xff] %v1829_v20  }
 0x171   : > { %v1438_v12 = vsel %vm1408_vm2, %v1393_v41, %v1423_v25 }
 0x172   : > { %v1795_v47 = vpack.c.bf16 %v1438_v12, %v1438_v12 }
 0x174   : > { %1514 = vst [vmem:[%s2526_s13 + $0x38] sm:$0xf] %v1795_v47 }
 0x175 PF: > { %s13_s12 = sadd.s32 1, %s1936_s12  }
 0x176   : > { %p10_p4 = scmp.ge.s32.totalorder %s13_s12, 4  }
 0x178   :  { %12 = sbr.rel (!%p10_p4) target bundleno = 1 (0x1), region = 65 }

</bundles_post_ra>
